<compile_context>
chip_gen: v7x
topology: tpu7x:2x2x1
jax: 0.10.0
libtpu: 0.0.40
codegen_flags: <defaults>
</compile_context>

<pallas_src>
import functools

import numpy as np
import jax
import jax.numpy as jnp
from jax.experimental import pallas as pl
from jax.experimental.pallas import tpu as pltpu


# ----------------------------------------------------------------------------
# Pallas kernels: single-shot matmul with fused bias (+ residual) + ReLU.
# The reduction dimension is untiled, so there is no accumulator scratch /
# init / finalize -- just one MXU dot, the epilogue, and the store.
# ----------------------------------------------------------------------------
def _mm_bias_kernel(a_ref, b_ref, c_ref, o_ref, *, relu):
    acc = jnp.dot(a_ref[...], b_ref[...], preferred_element_type=jnp.float32)
    acc = acc + c_ref[...]
    if relu:
        acc = jnp.maximum(acc, 0.0)
    o_ref[...] = acc.astype(o_ref.dtype)


def _mm_bias_res_kernel(a_ref, b_ref, c_ref, r_ref, o_ref, *, relu):
    acc = jnp.dot(a_ref[...], b_ref[...], preferred_element_type=jnp.float32)
    acc = acc + c_ref[...] + r_ref[...].astype(jnp.float32)
    if relu:
        acc = jnp.maximum(acc, 0.0)
    o_ref[...] = acc.astype(o_ref.dtype)


def _cdiv(a, b):
    return (a + b - 1) // b


_TM_CAP = 256  # with untiled K (<=4608) keeps VMEM ~10 MiB on every generation


def _pick_tm(m):
    # Full-dim block for small M (late layers / tiny test shapes); otherwise a
    # 256-row tile with a cdiv grid (partial tail blocks are masked on store).
    return m if m <= _TM_CAP else _TM_CAP


def _pick_tn(n_true, m_blocks):
    # Full-dim N block when N is not lane-aligned (64-ch layers, fc=1000):
    # masked vst beats doubling FLOPs + output HBM writes via padding.
    if n_true <= 128 or n_true % 128 != 0:
        return n_true
    tn = 256 if n_true % 256 == 0 else 128
    # Expose >=2 parallel grid blocks for megacore parts (v7x) when the M axis
    # collapses to a single block (small-M late layers).
    if m_blocks <= 1 and tn > 128 and n_true // tn < 2:
        tn = 128
    return tn


def fused_matmul(a, b, bias, residual=None, relu=False, out_dtype=jnp.bfloat16):
    """out = relu?( a @ b + bias [+ residual] ) with a single Pallas call.

    a:        (M, K) activations (cast to bf16 here).
    b:        (K, N) bf16 weights, BN scale folded in, stored unpadded at init.
    bias:     (1, N) f32 bias (BN shift folded in).
    residual: (M, N) or None.
    """
    M, K = a.shape
    Kb, Nt = b.shape
    assert K == Kb, (K, Kb)

    TM = _pick_tm(M)
    m_blocks = _cdiv(M, TM)
    TN = _pick_tn(Nt, m_blocks)
    n_blocks = _cdiv(Nt, TN)
    grid = (m_blocks, n_blocks)          # N innermost: A tile fetched once per i

    a = a.astype(jnp.bfloat16)

    a_spec = pl.BlockSpec((TM, K), lambda i, j: (i, 0))
    b_spec = pl.BlockSpec((K, TN), lambda i, j: (0, j))
    c_spec = pl.BlockSpec((1, TN), lambda i, j: (0, j))
    o_spec = pl.BlockSpec((TM, TN), lambda i, j: (i, j))

    common = dict(
        out_shape=jax.ShapeDtypeStruct((M, Nt), out_dtype),
        out_specs=o_spec,
        grid=grid,
        compiler_params=pltpu.CompilerParams(
            dimension_semantics=("parallel", "parallel")),
    )

    if residual is None:
        return pl.pallas_call(
            functools.partial(_mm_bias_kernel, relu=relu),
            in_specs=[a_spec, b_spec, c_spec],
            **common,
        )(a, b, bias)

    r = residual.astype(jnp.bfloat16)
    r_spec = pl.BlockSpec((TM, TN), lambda i, j: (i, j))
    return pl.pallas_call(
        functools.partial(_mm_bias_res_kernel, relu=relu),
        in_specs=[a_spec, b_spec, c_spec, r_spec],
        **common,
    )(a, b, bias, r)


# ----------------------------------------------------------------------------
# Glue: im2col, conv+bn wrapper, maxpool
# ----------------------------------------------------------------------------
def im2col(x, kh, kw, stride, pad):
    """x: (N, H, W, C) -> (N*Ho*Wo, kh*kw*C), column ordering (kh, kw, C)."""
    N, H, W, C = x.shape
    xp = x if pad == 0 else jnp.pad(x, ((0, 0), (pad, pad), (pad, pad), (0, 0)))
    Ho = (H + 2 * pad - kh) // stride + 1
    Wo = (W + 2 * pad - kw) // stride + 1
    patches = []
    for i in range(kh):
        for j in range(kw):
            patches.append(xp[:, i:i + stride * Ho:stride,
                              j:j + stride * Wo:stride, :])
    if len(patches) == 1:
        cols = patches[0]
    else:
        cols = jnp.concatenate(patches, axis=-1)       # (N, Ho, Wo, kh*kw*C)
    return cols.reshape(N * Ho * Wo, kh * kw * C), Ho, Wo


def conv_bn(x, p, stride, relu, residual=None, out_dtype=jnp.bfloat16):
    """Conv2d(+bias) + BatchNorm(eval) [+ residual] [+ ReLU] via Pallas."""
    N = x.shape[0]
    k = p['k']
    pad = (k - 1) // 2
    cols, Ho, Wo = im2col(x, k, k, stride, pad)
    res2d = None if residual is None else residual.reshape(-1, residual.shape[-1])
    out = fused_matmul(cols, p['w'], p['bias'],
                       residual=res2d, relu=relu, out_dtype=out_dtype)
    return out.reshape(N, Ho, Wo, out.shape[-1])


def maxpool_3x3_s2_p1(x):
    # TODO(synk): plain-JAX glue (lax.reduce_window), not fused into the stem.
    return jax.lax.reduce_window(
        x, jnp.array(-jnp.inf, x.dtype), jax.lax.max,
        window_dimensions=(1, 3, 3, 1),
        window_strides=(1, 2, 2, 1),
        padding=[(0, 0), (1, 1), (1, 1), (0, 0)],
    )


# ----------------------------------------------------------------------------
# Parameter construction (deterministic, synthetic). BN folded once; weights
# stored unpadded as (K, N) bf16, bias as (1, N) f32.
# ----------------------------------------------------------------------------
STEM_CIN_STORE = 8   # stem input channels padded 3 -> 8 once (K: 147 -> 392)


def init_conv_bn(key, cin, cout, k, conv_bias=True, cin_store=None):
    k1, k2, k3, k4, k5, k6 = jax.random.split(key, 6)
    w = jax.random.normal(k1, (k, k, cin, cout), jnp.float32) / np.sqrt(k * k * cin)
    b = (0.1 * jax.random.normal(k2, (cout,), jnp.float32)) if conv_bias \
        else jnp.zeros((cout,), jnp.float32)
    gamma = 1.0 + 0.1 * jax.random.normal(k3, (cout,), jnp.float32)
    beta = 0.1 * jax.random.normal(k4, (cout,), jnp.float32)
    mean = 0.1 * jax.random.normal(k5, (cout,), jnp.float32)
    var = jnp.abs(1.0 + 0.1 * jax.random.normal(k6, (cout,), jnp.float32))
    eps = 1e-5
    scale = gamma / jnp.sqrt(var + eps)            # fold BN (eval mode)
    bias = scale * (b - mean) + beta

    cin_store = cin if cin_store is None else cin_store
    if cin_store > cin:                            # zero-pad input-channel axis
        w = jnp.pad(w, ((0, 0), (0, 0), (0, cin_store - cin), (0, 0)))
    w_col = w.reshape(k * k * cin_store, cout) * scale[None, :]
    return {'w': w_col.astype(jnp.bfloat16),
            'bias': bias[None, :].astype(jnp.float32),
            'k': k}


# (in_channels, out_channels, stride) for the 16 residual blocks of ResNet34
BLOCK_CFG = (
    [(64, 64, 1)] * 3 +
    [(64, 128, 2)] + [(128, 128, 1)] * 3 +
    [(128, 256, 2)] + [(256, 256, 1)] * 5 +
    [(256, 512, 2)] + [(512, 512, 1)] * 2
)


def init_params(key, num_classes=1000):
    keys = iter(jax.random.split(key, 64))
    params = {'stem': init_conv_bn(next(keys), 3, 64, 7, cin_store=STEM_CIN_STORE),
              'stem_cin': STEM_CIN_STORE}
    blocks = []
    for cin, cout, s in BLOCK_CFG:
        blk = {
            's': s,
            'conv1': init_conv_bn(next(keys), cin, cout, 3),
            'conv2': init_conv_bn(next(keys), cout, cout, 3),
            'down': (init_conv_bn(next(keys), cin, cout, 1, conv_bias=False)
                     if (s != 1 or cin != cout) else None),
        }
        blocks.append(blk)
    params['blocks'] = blocks

    kf1, kf2 = jax.random.split(next(keys))
    fc_w = jax.random.normal(kf1, (512, num_classes), jnp.float32) / np.sqrt(512)
    fc_b = 0.1 * jax.random.normal(kf2, (num_classes,), jnp.float32)
    params['fc_w'] = fc_w.astype(jnp.bfloat16)
    params['fc_b'] = fc_b[None, :].astype(jnp.float32)
    return params


# ----------------------------------------------------------------------------
# Forward pass
# ----------------------------------------------------------------------------
def resnet34_forward(x_nchw, params):
    # NCHW (PyTorch) -> NHWC internally, bf16 activations.
    x = jnp.transpose(x_nchw, (0, 2, 3, 1)).astype(jnp.bfloat16)
    # pad stem input channels once (3 -> 8); stem weights were padded at init.
    c_store = params['stem_cin']
    if x.shape[-1] < c_store:
        x = jnp.pad(x, ((0, 0), (0, 0), (0, 0), (0, c_store - x.shape[-1])))

    # stem: 7x7 s2 conv + BN + ReLU, then 3x3 s2 maxpool
    x = conv_bn(x, params['stem'], stride=2, relu=True)
    x = maxpool_3x3_s2_p1(x)

    # residual blocks
    for blk in params['blocks']:
        identity = x
        out = conv_bn(x, blk['conv1'], stride=blk['s'], relu=True)
        if blk['down'] is not None:
            identity = conv_bn(x, blk['down'], stride=blk['s'], relu=False)
        # second conv: BN + residual add + ReLU fused in the Pallas epilogue
        x = conv_bn(out, blk['conv2'], stride=1, relu=True, residual=identity)

    # adaptive avg pool to (1,1) + flatten (f32 reduction)
    x = jnp.mean(x.astype(jnp.float32), axis=(1, 2))            # (N, 512)

    # classifier (Linear) via the same Pallas kernel (no residual, no relu)
    logits = fused_matmul(x, params['fc_w'], params['fc_b'],
                          residual=None, relu=False, out_dtype=jnp.float32)
    return logits


if __name__ == "__main__":
    key = jax.random.PRNGKey(0)
    k_in, k_par = jax.random.split(key)
    # small shapes consistent with the module: batch=2, 3 input channels, 16x16
    x = jax.random.normal(k_in, (2, 3, 16, 16), jnp.float32)
    params = init_params(k_par, num_classes=1000)

    logits = resnet34_forward(x, params)
    jax.block_until_ready(logits)
    assert logits.shape == (2, 1000) and logits.dtype == jnp.float32
    assert bool(jnp.all(jnp.isfinite(logits)))
    print("KERNEL_OK")
</pallas_src>

<mosaic_0001>
module attributes {stable_mosaic.version = 11 : i64} {
  func.func @_mm_bias_kernel(%arg0: i32, %arg1: i32, %arg2: memref<128x392xbf16, #tpu.memory_space<vmem>>, %arg3: memref<392x64xbf16, #tpu.memory_space<vmem>>, %arg4: memref<1x64xf32, #tpu.memory_space<vmem>>, %arg5: memref<128x64xbf16, #tpu.memory_space<vmem>>) attributes {dimension_semantics = [#tpu.dimension_semantics<parallel>, #tpu.dimension_semantics<parallel>], iteration_bounds = array<i64: 1, 1>, scalar_prefetch = 0 : i64, scratch_operands = 0 : i64, tpu.core_type = #tpu.core_type<tc>, window_params = [{transform_indices = @transform_0, window_bounds = array<i64: 128, 392>}, {transform_indices = @transform_1, window_bounds = array<i64: 392, 64>}, {transform_indices = @transform_2, window_bounds = array<i64: 1, 64>}, {transform_indices = @transform_3, window_bounds = array<i64: 128, 64>}]} {
    %c0 = arith.constant 0 : index
    %c0_0 = arith.constant 0 : index
    %0 = vector.load %arg2[%c0, %c0_0] : memref<128x392xbf16, #tpu.memory_space<vmem>>, vector<128x392xbf16>
    %c0_1 = arith.constant 0 : index
    %c0_2 = arith.constant 0 : index
    %1 = vector.load %arg3[%c0_1, %c0_2] : memref<392x64xbf16, #tpu.memory_space<vmem>>, vector<392x64xbf16>
    %cst = arith.constant dense<0.000000e+00> : vector<128x64xf32>
    %2 = tpu.matmul %0, %1, %cst {dimension_numbers = #tpu.dot_dimension_numbers<[1], [0], [0], [1], [0, 0, 1, 1], [], []>} : vector<128x392xbf16>, vector<392x64xbf16>, vector<128x64xf32> -> vector<128x64xf32>
    %c0_3 = arith.constant 0 : index
    %c0_4 = arith.constant 0 : index
    %3 = vector.load %arg4[%c0_3, %c0_4] : memref<1x64xf32, #tpu.memory_space<vmem>>, vector<1x64xf32>
    %4 = vector.broadcast %3 : vector<1x64xf32> to vector<128x64xf32>
    %5 = arith.addf %2, %4 : vector<128x64xf32>
    %cst_5 = arith.constant 0.000000e+00 : f32
    %6 = vector.broadcast %cst_5 : f32 to vector<128x64xf32>
    %7 = arith.maximumf %5, %6 : vector<128x64xf32>
    %8 = arith.truncf %7 : vector<128x64xf32> to vector<128x64xbf16>
    %c0_6 = arith.constant 0 : index
    %c0_7 = arith.constant 0 : index
    %9 = vector.load %arg5[%c0_6, %c0_7] : memref<128x64xbf16, #tpu.memory_space<vmem>>, vector<128x64xbf16>
    tpu.vector_store %arg5[%c0_6, %c0_7], %8 {strides = array<i32>} : memref<128x64xbf16, #tpu.memory_space<vmem>>, vector<128x64xbf16>,
    return
  }
  func.func @transform_0(%arg0: i32, %arg1: i32) -> (i32, i32) {
    %c0_i32 = arith.constant 0 : i32
    %c0_i32_0 = arith.constant 0 : i32
    return %arg0, %c0_i32 : i32, i32
  }
  func.func @transform_1(%arg0: i32, %arg1: i32) -> (i32, i32) {
    %c0_i32 = arith.constant 0 : i32
    %c0_i32_0 = arith.constant 0 : i32
    return %c0_i32, %arg1 : i32, i32
  }
  func.func @transform_2(%arg0: i32, %arg1: i32) -> (i32, i32) {
    %c0_i32 = arith.constant 0 : i32
    %c0_i32_0 = arith.constant 0 : i32
    return %c0_i32, %arg1 : i32, i32
  }
  func.func @transform_3(%arg0: i32, %arg1: i32) -> (i32, i32) {
    %c0_i32 = arith.constant 0 : i32
    return %arg0, %arg1 : i32, i32
  }
}

</mosaic_0001>

<bundles_post_ra>
// kernel: tpu_custom_call.1
= control target key start
LH: loop header
LB: loop body
LE: loop exit
PB: predicated region body
PF: predicated region fallthrough
CT: control target
= control target key end

     0   :  { %v962_v0 = vmov 0   ;;  %vm402_vm0 = vcmask 64512   ;;  %vm427_vm1 = vcmask 1043456   ;;  %vm705_vm2 = vcmask 519168   ;;  %s1256_s1 = inlined_call_operand.vmem [shape: bf16[392,64], index: 1, kind: input, shape index: {}]   ;;  %s1257_s0 = inlined_call_operand.vmem [shape: bf16[128,392], index: 0, kind: input, shape index: {}]   ;;  %s1258_s2 = inlined_call_operand.vmem [shape: f32[1,64], index: 2, kind: input, shape index: {}]   ;;  %s1259_s3 = inlined_call_operand.vmem [shape: bf16[128,64], index: 3, kind: output, shape index: {}]  }
   0x1   :  { %528 = vmatprep.subr.bf16.mxu1 %v962_v0  ;;  %v889_v1 = vld [vmem:[%s1256_s1 + $0x40] sm:$0xff]   ;;  %v892_v4 = vld [vmem:[%s1256_s1 + $0x48] sm:$0xff]   ;;  %v895_v7 = vld [vmem:[%s1256_s1 + $0x50] sm:$0xff]  }
   0x2   :  { %v890_v2 = vld [vmem:[%s1256_s1 + $0x80] sm:$0xff]   ;;  %824 = vmatprep.subr.bf16.mxu0 %v889_v1  ;;  %v893_v5 = vld [vmem:[%s1256_s1 + $0x88] sm:$0xff]   ;;  %v896_v8 = vld [vmem:[%s1256_s1 + $0x90] sm:$0xff]  }
   0x3   :  { %v891_v3 = vld [vmem:[%s1256_s1] sm:$0xff]   ;;  %529 = vmatpush1.bf16.msra.mxu1 %v890_v2  ;;  %v894_v6 = vld [vmem:[%s1256_s1 + $0x8] sm:$0xff]   ;;  %v897_v9 = vld [vmem:[%s1256_s1 + $0x10] sm:$0xff]  }
   0x4   :  { %825 = vmatpush3.bf16.msra.mxu0 %v891_v3  ;;  %530 = vmatprep.subr.bf16.mxu1 %v962_v0  ;;  %v898_v10 = vld [vmem:[%s1256_s1 + $0x58] sm:$0xff]   ;;  %v901_v13 = vld [vmem:[%s1256_s1 + $0x60] sm:$0xff]   ;;  %v904_v16 = vld [vmem:[%s1256_s1 + $0x68] sm:$0xff]  }
   0x5   :  { %826 = vmatprep.subr.bf16.mxu0 %v892_v4  ;;  %v899_v11 = vld [vmem:[%s1256_s1 + $0x98] sm:$0xff]   ;;  %v902_v14 = vld [vmem:[%s1256_s1 + $0xa0] sm:$0xff]   ;;  %v905_v17 = vld [vmem:[%s1256_s1 + $0xa8] sm:$0xff]  }
   0x6   :  { %v900_v12 = vld [vmem:[%s1256_s1 + $0x18] sm:$0xff]   ;;  %v903_v15 = vld [vmem:[%s1256_s1 + $0x20] sm:$0xff]   ;;  %v906_v18 = vld [vmem:[%s1256_s1 + $0x28] sm:$0xff]  }
   0x7   :  { %531 = vmatpush1.bf16.msra.mxu1 %v893_v5  ;;  %v907_v19 = vld [vmem:[%s1256_s1 + $0x70] sm:$0xff]   ;;  %v910_v22 = vld [vmem:[%s1256_s1 + $0x78] sm:$0xff]   ;;  %v916_v27 = vld [vmem:[%s1256_s1 + $0xc0] ss:$0 sps:$4 sm:$0xff]  }
   0x8   :  { %827 = vmatpush3.bf16.msra.mxu0 %v894_v6  ;;  %532 = vmatprep.subr.bf16.mxu1 %v962_v0  ;;  %v908_v20 = vld [vmem:[%s1256_s1 + $0xb0] sm:$0xff]   ;;  %v911_v24 = vld [vmem:[%s1256_s1 + $0xb8] sm:$0xff]   ;;  %v429_v29 = vsel %vm427_vm1, %v916_v27, 0  ;;  %v1174_v61 = vld [vmem:[%s1258_s2] ss:$0 sm:$0xff] }
   0x9   :  { %828 = vmatprep.subr.bf16.mxu0 %v895_v7  ;;  %v909_v21 = vld [vmem:[%s1256_s1 + $0x30] sm:$0xff]   ;;  %v919_v25 = vld [vmem:[%s1257_s0 + $0xc] ss:$16 sps:$4 sm:$0xff]   ;;  %v917_v31 = vld [vmem:[%s1257_s0 + $0x8] ss:$16 sps:$4 sm:$0xff]  }
   0xa   :  { %v915_v23 = vld [vmem:[%s1257_s0 + $0x4] ss:$16 sps:$4 sm:$0xff]   ;;  %v912_v26 = vld [vmem:[%s1256_s1 + $0x38] sm:$0xff]   ;;  %784 = vmatprep.mubr.msk.bf16.mxu1 %vm402_vm0, %v919_v25  ;;  %v913_v28 = vld [vmem:[%s1257_s0] ss:$16 sps:$4 sm:$0xff]  }
   0xb   :  { %533 = vmatpush1.bf16.msra.mxu1 %v896_v8  ;;  %463 = vmatprep.mubr.bf16.mxu0 %v915_v23  ;;  %v920_v30 = vld [vmem:[%s1257_s0 + $0x24] ss:$16 sps:$4 sm:$0xff]   ;;  %v923_v32 = vld [vmem:[%s1257_s0 + $0x2c] ss:$16 sps:$4 sm:$0xff]   ;;  %v922_v33 = vld [vmem:[%s1257_s0 + $0x20] ss:$16 sps:$4 sm:$0xff]  }
   0xc   :  { %829 = vmatpush3.bf16.msra.mxu0 %v897_v9  ;;  %534 = vmatprep.subr.bf16.mxu1 %v962_v0  ;;  %v926_v34 = vld [vmem:[%s1257_s0 + $0x44] ss:$16 sps:$4 sm:$0xff]   ;;  %v925_v35 = vld [vmem:[%s1257_s0 + $0x28] ss:$16 sps:$4 sm:$0xff]   ;;  %v929_v36 = vld [vmem:[%s1257_s0 + $0x4c] ss:$16 sps:$4 sm:$0xff]  }
   0xd   :  { %830 = vmatprep.subr.bf16.mxu0 %v898_v10  ;;  %v928_v37 = vld [vmem:[%s1257_s0 + $0x40] ss:$16 sps:$4 sm:$0xff]   ;;  %v932_v38 = vld [vmem:[%s1257_s0 + $0x64] ss:$16 sps:$4 sm:$0xff]   ;;  %v931_v39 = vld [vmem:[%s1257_s0 + $0x48] ss:$16 sps:$4 sm:$0xff]  }
   0xe   :  { %v935_v40 = vld [vmem:[%s1257_s0 + $0x6c] ss:$16 sps:$4 sm:$0xff]   ;;  %v934_v41 = vld [vmem:[%s1257_s0 + $0x60] ss:$16 sps:$4 sm:$0xff]   ;;  %v938_v42 = vld [vmem:[%s1257_s0 + $0x84] ss:$16 sps:$4 sm:$0xff]  }
   0xf   :  { %535 = vmatpush1.bf16.msra.mxu1 %v899_v11  ;;  %v937_v43 = vld [vmem:[%s1257_s0 + $0x68] ss:$16 sps:$4 sm:$0xff]   ;;  %v941_v44 = vld [vmem:[%s1257_s0 + $0x8c] ss:$16 sps:$4 sm:$0xff]   ;;  %v940_v45 = vld [vmem:[%s1257_s0 + $0x80] ss:$16 sps:$4 sm:$0xff]  }
  0x10   :  { %831 = vmatpush3.bf16.msra.mxu0 %v900_v12  ;;  %536 = vmatprep.subr.bf16.mxu1 %v962_v0  ;;  %v944_v46 = vld [vmem:[%s1257_s0 + $0xa4] ss:$16 sps:$4 sm:$0xff]   ;;  %v943_v47 = vld [vmem:[%s1257_s0 + $0x88] ss:$16 sps:$4 sm:$0xff]   ;;  %v947_v48 = vld [vmem:[%s1257_s0 + $0xac] ss:$16 sps:$4 sm:$0xff]  }
  0x11   :  { %832 = vmatprep.subr.bf16.mxu0 %v901_v13  ;;  %v946_v49 = vld [vmem:[%s1257_s0 + $0xa0] ss:$16 sps:$4 sm:$0xff]   ;;  %v950_v50 = vld [vmem:[%s1257_s0 + $0xc4] ss:$16 sps:$4 sm:$0xff]   ;;  %v949_v51 = vld [vmem:[%s1257_s0 + $0xa8] ss:$16 sps:$4 sm:$0xff]  }
  0x12   :  { %v953_v52 = vld [vmem:[%s1257_s0 + $0xcc] ss:$16 sps:$4 sm:$0xff]   ;;  %v952_v53 = vld [vmem:[%s1257_s0 + $0xc0] ss:$16 sps:$4 sm:$0xff]   ;;  %v956_v54 = vld [vmem:[%s1257_s0 + $0xe4] ss:$16 sps:$4 sm:$0xff]  }
  0x13   :  { %537 = vmatpush1.bf16.msra.mxu1 %v902_v14  ;;  %v955_v55 = vld [vmem:[%s1257_s0 + $0xc8] ss:$16 sps:$4 sm:$0xff]   ;;  %v959_v56 = vld [vmem:[%s1257_s0 + $0xec] ss:$16 sps:$4 sm:$0xff]   ;;  %v958_v57 = vld [vmem:[%s1257_s0 + $0xe0] ss:$16 sps:$4 sm:$0xff]  }
  0x14   :  { %833 = vmatpush3.bf16.msra.mxu0 %v903_v15  ;;  %538 = vmatprep.subr.bf16.mxu1 %v962_v0  ;;  %v961_v58 = vld [vmem:[%s1257_s0 + $0xe8] ss:$16 sps:$4 sm:$0xff]  }
  0x15   :  { %834 = vmatprep.subr.bf16.mxu0 %v904_v16 }
  0x17   :  { %539 = vmatpush1.bf16.msra.mxu1 %v905_v17 }
  0x18   :  { %835 = vmatpush3.bf16.msra.mxu0 %v906_v18  ;;  %540 = vmatprep.subr.bf16.mxu1 %v962_v0 }
  0x19   :  { %836 = vmatprep.subr.bf16.mxu0 %v907_v19 }
  0x1b   :  { %541 = vmatpush1.bf16.msra.mxu1 %v908_v20 }
  0x1c   :  { %837 = vmatpush3.bf16.msra.mxu0 %v909_v21  ;;  %542 = vmatprep.subr.bf16.mxu1 %v962_v0 }
  0x1d   :  { %838 = vmatprep.subr.bf16.mxu0 %v910_v22 }
  0x1f   :  { %543 = vmatpush1.bf16.msra.mxu1 %v911_v24 }
  0x20   :  { %839 = vmatpush3.bf16.msra.mxu0 %v912_v26  ;;  %544 = vmatprep.subr.bf16.mxu1 %v962_v0 }
  0x23   :  { %464 = vmatmul.mubr.bf16.vlgmr.msra.gmra.mrb[0].mxu0 %v913_v28  ;;  %545 = vmatpush1.bf16.msra.mxu1 %v429_v29 }
  0x24   :  { %471 = vmatprep.mubr.bf16.mxu0 %v920_v30 }
  0x26   :  { %561 = vmatmul.mubr.bf16.vlgmr.msra.gmra.mrb[0].mxu1 %v917_v31 }
  0x27   :  { %785 = vmatprep.mubr.msk.bf16.mxu1 %vm402_vm0, %v923_v32 }
  0x2b   :  { %472 = vmatmul.mubr.bf16.gmra.mrb[4].mxu0 %v922_v33 }
  0x2c   :  { %479 = vmatprep.mubr.bf16.mxu0 %v926_v34 }
  0x2e   :  { %569 = vmatmul.mubr.bf16.gmra.mrb[4].mxu1 %v925_v35 }
  0x2f   :  { %786 = vmatprep.mubr.msk.bf16.mxu1 %vm402_vm0, %v929_v36 }
  0x33   :  { %480 = vmatmul.mubr.bf16.gmra.mrb[8].mxu0 %v928_v37 }
  0x34   :  { %487 = vmatprep.mubr.bf16.mxu0 %v932_v38 }
  0x36   :  { %577 = vmatmul.mubr.bf16.gmra.mrb[8].mxu1 %v931_v39 }
  0x37   :  { %787 = vmatprep.mubr.msk.bf16.mxu1 %vm402_vm0, %v935_v40 }
  0x3b   :  { %488 = vmatmul.mubr.bf16.gmra.mrb[12].mxu0 %v934_v41 }
  0x3c   :  { %495 = vmatprep.mubr.bf16.mxu0 %v938_v42 }
  0x3e   :  { %585 = vmatmul.mubr.bf16.gmra.mrb[12].mxu1 %v937_v43 }
  0x3f   :  { %788 = vmatprep.mubr.msk.bf16.mxu1 %vm402_vm0, %v941_v44 }
  0x43   :  { %496 = vmatmul.mubr.bf16.gmra.mrb[16].mxu0 %v940_v45 }
  0x44   :  { %503 = vmatprep.mubr.bf16.mxu0 %v944_v46 }
  0x46   :  { %593 = vmatmul.mubr.bf16.gmra.mrb[16].mxu1 %v943_v47 }
  0x47   :  { %789 = vmatprep.mubr.msk.bf16.mxu1 %vm402_vm0, %v947_v48 }
  0x4b   :  { %504 = vmatmul.mubr.bf16.gmra.mrb[20].mxu0 %v946_v49 }
  0x4c   :  { %511 = vmatprep.mubr.bf16.mxu0 %v950_v50 }
  0x4e   :  { %601 = vmatmul.mubr.bf16.gmra.mrb[20].mxu1 %v949_v51 }
  0x4f   :  { %790 = vmatprep.mubr.msk.bf16.mxu1 %vm402_vm0, %v953_v52 }
  0x53   :  { %512 = vmatmul.mubr.bf16.gmra.mrb[24].mxu0 %v952_v53 }
  0x54   :  { %519 = vmatprep.mubr.bf16.mxu0 %v956_v54 }
  0x56   :  { %609 = vmatmul.mubr.bf16.gmra.mrb[24].mxu1 %v955_v55 }
  0x57   :  { %791 = vmatprep.mubr.msk.bf16.mxu1 %vm402_vm0, %v959_v56 }
  0x5b   :  { %520 = vmatmul.mubr.bf16.gmra.mrb[28].mxu0 %v958_v57 }
  0x5e   :  { %617 = vmatmul.mubr.bf16.gmra.mrb[28].mxu1 %v961_v58 }
  0xf6   :  { %v840_v59 = vpop.f32.mrb[0].mxu0 }
  0xf7   :  { %v841_v60 = vpop.f32.mrb[1].mxu0 }
  0xf8   :  { %v842_v62 = vadd.f32 %v841_v60, %v840_v59  ;;  %v843_v63 = vpop.f32.mrb[2].mxu0 }
  0xf9   :  { %v844_v0 = vpop.f32.mrb[3].mxu0  ;;  %v562_v1 = vpop.f32.mrb[0].mxu1 }
  0xfa   :  { %v845_v2 = vadd.f32 %v844_v0, %v843_v63  ;;  %v466_v3 = vadd.f32 %v842_v62, %v1174_v61  ;;  %v564_v4 = vpop.f32.mrb[1].mxu1 }
  0xfb   :  { %v565_v5 = vpop.f32.mrb[2].mxu1 }
  0xfc   :  { %v563_v6 = vadd.f32 %v562_v1, %v466_v3  ;;  %v469_v7 = vadd.f32 %v845_v2, %v1174_v61  ;;  %v567_v8 = vpop.f32.mrb[3].mxu1 }
  0xfe   :  { %v625_v9 = vmax.f32 %v563_v6, 0.0  ;;  %v566_v10 = vadd.f32 %v565_v5, %v469_v7  ;;  %v846_v11 = vpop.f32.mrb[4].mxu0 }
  0xff   :  { %v847_v12 = vpop.f32.mrb[5].mxu0 }
 0x100   :  { %v808_v13 = vpack.c.bf16 %v625_v9, %v625_v9  ;;  %v626_v14 = vmax.f32 %v566_v10, 0.0  ;;  %v848_v15 = vadd.f32 %v847_v12, %v846_v11  ;;  %v849_v16 = vpop.f32.mrb[6].mxu0 }
 0x101   :  { %v850_v17 = vpop.f32.mrb[7].mxu0  ;;  %v570_v18 = vpop.f32.mrb[4].mxu1 }
 0x102   :  { %706 = vst.msk [vmem:[%s1259_s3] sm:$0xf] %vm705_vm2, %v808_v13  ;;  %v809_v19 = vpack.c.bf16 %v626_v14, %v626_v14  ;;  %v851_v20 = vadd.f32 %v850_v17, %v849_v16  ;;  %v474_v21 = vadd.f32 %v848_v15, %v1174_v61  ;;  %v572_v22 = vpop.f32.mrb[5].mxu1 }
 0x103   :  { %v573_v23 = vpop.f32.mrb[6].mxu1 }
 0x104   :  { %707 = vst.msk [vmem:[%s1259_s3 + $0x4] sm:$0xf] %vm705_vm2, %v809_v19  ;;  %v571_v24 = vadd.f32 %v570_v18, %v474_v21  ;;  %v477_v25 = vadd.f32 %v851_v20, %v1174_v61  ;;  %v575_v26 = vpop.f32.mrb[7].mxu1 }
 0x106   :  { %v627_v27 = vmax.f32 %v571_v24, 0.0  ;;  %v574_v28 = vadd.f32 %v573_v23, %v477_v25  ;;  %v852_v29 = vpop.f32.mrb[8].mxu0 }
 0x107   :  { %v853_v30 = vpop.f32.mrb[9].mxu0 }
 0x108   :  { %v810_v31 = vpack.c.bf16 %v627_v27, %v627_v27  ;;  %v628_v32 = vmax.f32 %v574_v28, 0.0  ;;  %v854_v33 = vadd.f32 %v853_v30, %v852_v29  ;;  %v855_v34 = vpop.f32.mrb[10].mxu0 }
 0x109   :  { %v856_v35 = vpop.f32.mrb[11].mxu0  ;;  %v578_v36 = vpop.f32.mrb[8].mxu1 }
 0x10a   :  { %708 = vst.msk [vmem:[%s1259_s3 + $0x8] sm:$0xf] %vm705_vm2, %v810_v31  ;;  %v811_v37 = vpack.c.bf16 %v628_v32, %v628_v32  ;;  %v857_v38 = vadd.f32 %v856_v35, %v855_v34  ;;  %v482_v39 = vadd.f32 %v854_v33, %v1174_v61  ;;  %v580_v40 = vpop.f32.mrb[9].mxu1 }
 0x10b   :  { %v581_v41 = vpop.f32.mrb[10].mxu1 }
 0x10c   :  { %709 = vst.msk [vmem:[%s1259_s3 + $0xc] sm:$0xf] %vm705_vm2, %v811_v37  ;;  %v579_v42 = vadd.f32 %v578_v36, %v482_v39  ;;  %v485_v43 = vadd.f32 %v857_v38, %v1174_v61  ;;  %v583_v44 = vpop.f32.mrb[11].mxu1 }
 0x10e   :  { %v629_v45 = vmax.f32 %v579_v42, 0.0  ;;  %v582_v46 = vadd.f32 %v581_v41, %v485_v43  ;;  %v858_v47 = vpop.f32.mrb[12].mxu0 }
 0x10f   :  { %v859_v48 = vpop.f32.mrb[13].mxu0 }
 0x110   :  { %v812_v49 = vpack.c.bf16 %v629_v45, %v629_v45  ;;  %v630_v50 = vmax.f32 %v582_v46, 0.0  ;;  %v860_v51 = vadd.f32 %v859_v48, %v858_v47  ;;  %v861_v52 = vpop.f32.mrb[14].mxu0 }
 0x111   :  { %v862_v53 = vpop.f32.mrb[15].mxu0  ;;  %v586_v54 = vpop.f32.mrb[12].mxu1 }
 0x112   :  { %710 = vst.msk [vmem:[%s1259_s3 + $0x10] sm:$0xf] %vm705_vm2, %v812_v49  ;;  %v813_v55 = vpack.c.bf16 %v630_v50, %v630_v50  ;;  %v863_v56 = vadd.f32 %v862_v53, %v861_v52  ;;  %v490_v57 = vadd.f32 %v860_v51, %v1174_v61  ;;  %v588_v58 = vpop.f32.mrb[13].mxu1 }
 0x113   :  { %v589_v59 = vpop.f32.mrb[14].mxu1 }
 0x114   :  { %711 = vst.msk [vmem:[%s1259_s3 + $0x14] sm:$0xf] %vm705_vm2, %v813_v55  ;;  %v587_v60 = vadd.f32 %v586_v54, %v490_v57  ;;  %v493_v62 = vadd.f32 %v863_v56, %v1174_v61  ;;  %v591_v63 = vpop.f32.mrb[15].mxu1 }
 0x116   :  { %v631_v0 = vmax.f32 %v587_v60, 0.0  ;;  %v590_v1 = vadd.f32 %v589_v59, %v493_v62  ;;  %v864_v2 = vpop.f32.mrb[16].mxu0 }
 0x117   :  { %v865_v3 = vpop.f32.mrb[17].mxu0 }
 0x118   :  { %v814_v4 = vpack.c.bf16 %v631_v0, %v631_v0  ;;  %v632_v5 = vmax.f32 %v590_v1, 0.0  ;;  %v866_v6 = vadd.f32 %v865_v3, %v864_v2  ;;  %v867_v7 = vpop.f32.mrb[18].mxu0 }
 0x119   :  { %v868_v8 = vpop.f32.mrb[19].mxu0  ;;  %v594_v9 = vpop.f32.mrb[16].mxu1 }
 0x11a   :  { %712 = vst.msk [vmem:[%s1259_s3 + $0x18] sm:$0xf] %vm705_vm2, %v814_v4  ;;  %v815_v10 = vpack.c.bf16 %v632_v5, %v632_v5  ;;  %v869_v11 = vadd.f32 %v868_v8, %v867_v7  ;;  %v498_v12 = vadd.f32 %v866_v6, %v1174_v61  ;;  %v596_v13 = vpop.f32.mrb[17].mxu1 }
 0x11b   :  { %v597_v14 = vpop.f32.mrb[18].mxu1 }
 0x11c   :  { %713 = vst.msk [vmem:[%s1259_s3 + $0x1c] sm:$0xf] %vm705_vm2, %v815_v10  ;;  %v595_v15 = vadd.f32 %v594_v9, %v498_v12  ;;  %v501_v16 = vadd.f32 %v869_v11, %v1174_v61  ;;  %v599_v17 = vpop.f32.mrb[19].mxu1 }
 0x11e   :  { %v633_v18 = vmax.f32 %v595_v15, 0.0  ;;  %v598_v19 = vadd.f32 %v597_v14, %v501_v16  ;;  %v870_v20 = vpop.f32.mrb[20].mxu0 }
 0x11f   :  { %v871_v21 = vpop.f32.mrb[21].mxu0 }
 0x120   :  { %v816_v22 = vpack.c.bf16 %v633_v18, %v633_v18  ;;  %v634_v23 = vmax.f32 %v598_v19, 0.0  ;;  %v872_v24 = vadd.f32 %v871_v21, %v870_v20  ;;  %v873_v25 = vpop.f32.mrb[22].mxu0 }
 0x121   :  { %v874_v26 = vpop.f32.mrb[23].mxu0  ;;  %v602_v27 = vpop.f32.mrb[20].mxu1 }
 0x122   :  { %714 = vst.msk [vmem:[%s1259_s3 + $0x20] sm:$0xf] %vm705_vm2, %v816_v22  ;;  %v817_v28 = vpack.c.bf16 %v634_v23, %v634_v23  ;;  %v875_v29 = vadd.f32 %v874_v26, %v873_v25  ;;  %v506_v30 = vadd.f32 %v872_v24, %v1174_v61  ;;  %v604_v31 = vpop.f32.mrb[21].mxu1 }
 0x123   :  { %v605_v32 = vpop.f32.mrb[22].mxu1 }
 0x124   :  { %715 = vst.msk [vmem:[%s1259_s3 + $0x24] sm:$0xf] %vm705_vm2, %v817_v28  ;;  %v603_v33 = vadd.f32 %v602_v27, %v506_v30  ;;  %v509_v34 = vadd.f32 %v875_v29, %v1174_v61  ;;  %v607_v35 = vpop.f32.mrb[23].mxu1 }
 0x126   :  { %v635_v36 = vmax.f32 %v603_v33, 0.0  ;;  %v606_v37 = vadd.f32 %v605_v32, %v509_v34  ;;  %v876_v38 = vpop.f32.mrb[24].mxu0 }
 0x127   :  { %v877_v39 = vpop.f32.mrb[25].mxu0 }
 0x128   :  { %v818_v40 = vpack.c.bf16 %v635_v36, %v635_v36  ;;  %v636_v41 = vmax.f32 %v606_v37, 0.0  ;;  %v878_v42 = vadd.f32 %v877_v39, %v876_v38  ;;  %v879_v43 = vpop.f32.mrb[26].mxu0 }
 0x129   :  { %v880_v44 = vpop.f32.mrb[27].mxu0  ;;  %v610_v45 = vpop.f32.mrb[24].mxu1 }
 0x12a   :  { %716 = vst.msk [vmem:[%s1259_s3 + $0x28] sm:$0xf] %vm705_vm2, %v818_v40  ;;  %v819_v46 = vpack.c.bf16 %v636_v41, %v636_v41  ;;  %v881_v47 = vadd.f32 %v880_v44, %v879_v43  ;;  %v514_v48 = vadd.f32 %v878_v42, %v1174_v61  ;;  %v612_v49 = vpop.f32.mrb[25].mxu1 }
 0x12b   :  { %v613_v50 = vpop.f32.mrb[26].mxu1 }
 0x12c   :  { %717 = vst.msk [vmem:[%s1259_s3 + $0x2c] sm:$0xf] %vm705_vm2, %v819_v46  ;;  %v611_v51 = vadd.f32 %v610_v45, %v514_v48  ;;  %v517_v52 = vadd.f32 %v881_v47, %v1174_v61  ;;  %v615_v53 = vpop.f32.mrb[27].mxu1 }
 0x12e   :  { %v637_v54 = vmax.f32 %v611_v51, 0.0  ;;  %v614_v55 = vadd.f32 %v613_v50, %v517_v52  ;;  %v882_v56 = vpop.f32.mrb[28].mxu0 }
 0x12f   :  { %v883_v57 = vpop.f32.mrb[29].mxu0 }
 0x130   :  { %v820_v58 = vpack.c.bf16 %v637_v54, %v637_v54  ;;  %v638_v59 = vmax.f32 %v614_v55, 0.0  ;;  %v884_v60 = vadd.f32 %v883_v57, %v882_v56  ;;  %v885_v62 = vpop.f32.mrb[30].mxu0 }
 0x131   :  { %v886_v63 = vpop.f32.mrb[31].mxu0  ;;  %v618_v0 = vpop.f32.mrb[28].mxu1 }
 0x132   :  { %718 = vst.msk [vmem:[%s1259_s3 + $0x30] sm:$0xf] %vm705_vm2, %v820_v58  ;;  %v821_v1 = vpack.c.bf16 %v638_v59, %v638_v59  ;;  %v887_v2 = vadd.f32 %v886_v63, %v885_v62  ;;  %v522_v3 = vadd.f32 %v884_v60, %v1174_v61  ;;  %v620_v4 = vpop.f32.mrb[29].mxu1 }
 0x133   :  { %v621_v5 = vpop.f32.mrb[30].mxu1 }
 0x134   :  { %719 = vst.msk [vmem:[%s1259_s3 + $0x34] sm:$0xf] %vm705_vm2, %v821_v1  ;;  %v619_v6 = vadd.f32 %v618_v0, %v522_v3  ;;  %v525_v7 = vadd.f32 %v887_v2, %v1174_v61  ;;  %v623_v8 = vpop.f32.mrb[31].mxu1 }
 0x136   :  { %v639_v9 = vmax.f32 %v619_v6, 0.0  ;;  %v622_v10 = vadd.f32 %v621_v5, %v525_v7 }
 0x138   :  { %v822_v11 = vpack.c.bf16 %v639_v9, %v639_v9  ;;  %v640_v12 = vmax.f32 %v622_v10, 0.0 }
 0x13a   :  { %720 = vst.msk [vmem:[%s1259_s3 + $0x38] sm:$0xf] %vm705_vm2, %v822_v11  ;;  %v823_v13 = vpack.c.bf16 %v640_v12, %v640_v12 }
 0x13c   :  { %721 = vst.msk [vmem:[%s1259_s3 + $0x3c] sm:$0xf] %vm705_vm2, %v823_v13 }

</bundles_post_ra>
